<compile_context>
chip_gen: v6e
topology: v6e:2x2x1
jax: 0.10.0
libtpu: 0.0.40
codegen_flags: <defaults>
</compile_context>

<pallas_src>
import math

import jax
import jax.numpy as jnp
from jax.experimental import pallas as pl
from jax.experimental.pallas import tpu as pltpu

_TM_MAX = 512  # max batch-tile rows per grid step (multiple of 8 sublanes)


def _round_up(v, m):
    return (v + m - 1) // m * m


def _mlp_kernel(x_ref, w1_ref, b1_ref, w2_ref, b2_ref, o_ref):
    # hidden = relu(x @ w1 + b1)     (tm, H1P)  -- f32 accumulate on the MXU
    h = jnp.dot(x_ref[...], w1_ref[...], preferred_element_type=jnp.float32)
    h = jnp.maximum(h + b1_ref[...], 0.0)
    # out = hidden @ w2 + b2         (tm, OUTP) -- lane-dense unmasked store
    o = jnp.dot(h, w2_ref[...], preferred_element_type=jnp.float32)
    o_ref[...] = (o + b2_ref[...]).astype(o_ref.dtype)


@jax.jit
def my_network_forward(x, w1, b1, w2, b2):
    """MyNetwork.forward inference path: final_layer(relu(f1(x))).

    x: (B, input_size) f32, w1: (in, h1), b1: (1, h1), w2: (h1, out),
    b2: (1, out).  Returns (B, out) f32.
    """
    B, in_sz = x.shape
    h1 = w1.shape[1]
    out_w = w2.shape[1]

    # --- pad to TPU-friendly shapes (all padding is exact-math zero padding) ---
    H1P = _round_up(h1, 128)      # hidden lane dim -> full 128-lane MXU tiles
    OUTP = _round_up(out_w, 128)  # output lane dim -> unmasked vst

    tm = min(_TM_MAX, _round_up(B, 8))   # batch tile (multiple of 8 sublanes)
    Bp = _round_up(B, tm)

    xp = jnp.zeros((Bp, in_sz), jnp.float32).at[:B, :].set(x)
    w1p = jnp.zeros((in_sz, H1P), jnp.float32).at[:, :h1].set(w1)
    b1p = jnp.zeros((1, H1P), jnp.float32).at[:, :h1].set(b1)   # 0.0 bias pad
    w2p = jnp.zeros((H1P, OUTP), jnp.float32).at[:h1, :out_w].set(w2)
    b2p = jnp.zeros((1, OUTP), jnp.float32).at[:, :out_w].set(b2)

    grid = (Bp // tm,)

    flops = 2 * Bp * (in_sz * H1P + H1P * OUTP)
    bytes_accessed = 4 * (Bp * in_sz + in_sz * H1P + H1P + H1P * OUTP
                          + OUTP + Bp * OUTP)

    out_padded = pl.pallas_call(
        _mlp_kernel,
        out_shape=jax.ShapeDtypeStruct((Bp, OUTP), jnp.float32),
        grid=grid,
        in_specs=[
            pl.BlockSpec((tm, in_sz), lambda i: (i, 0)),    # x tiles stream
            pl.BlockSpec((in_sz, H1P), lambda i: (0, 0)),   # weights resident
            pl.BlockSpec((1, H1P), lambda i: (0, 0)),
            pl.BlockSpec((H1P, OUTP), lambda i: (0, 0)),
            pl.BlockSpec((1, OUTP), lambda i: (0, 0)),
        ],
        out_specs=pl.BlockSpec((tm, OUTP), lambda i: (i, 0)),
        compiler_params=pltpu.CompilerParams(
            dimension_semantics=("parallel",)),
        cost_estimate=pl.CostEstimate(
            flops=flops, transcendentals=0, bytes_accessed=bytes_accessed),
    )(xp, w1p, b1p, w2p, b2p)

    return out_padded[:B, :out_w]


def init_params(key, input_size, h1_width=50, out_width=1):
    """Deterministic parameter init mirroring MyNetwork.__init__:
       kaiming_uniform_(fan_in, relu) for weights, bias filled with 0.01."""
    k1, k2 = jax.random.split(key, 2)
    bound1 = math.sqrt(6.0 / input_size)        # kaiming uniform, gain=sqrt(2)
    w1 = jax.random.uniform(k1, (input_size, h1_width), jnp.float32,
                            minval=-bound1, maxval=bound1)
    b1 = jnp.full((1, h1_width), 0.01, jnp.float32)
    bound2 = math.sqrt(6.0 / h1_width)
    w2 = jax.random.uniform(k2, (h1_width, out_width), jnp.float32,
                            minval=-bound2, maxval=bound2)
    b2 = jnp.full((1, out_width), 0.01, jnp.float32)
    return w1, b1, w2, b2


if __name__ == "__main__":
    key = jax.random.PRNGKey(0)
    kx, kp, kx2 = jax.random.split(key, 3)

    input_size = 32
    h1_width = 50
    out_width = 1
    w1, b1, w2, b2 = init_params(kp, input_size, h1_width, out_width)

    # Small batch (matches typical module usage).
    batch = 8
    x = jax.random.normal(kx, (batch, input_size), jnp.float32)
    out = jax.block_until_ready(my_network_forward(x, w1, b1, w2, b2))
    ref = jnp.maximum(x @ w1 + b1, 0.0) @ w2 + b2
    assert out.shape == (batch, out_width)
    assert jnp.allclose(out, ref, atol=1e-5, rtol=1e-5)

    # Larger, non-tile-aligned batch: exercises batch tiling + padding path.
    batch2 = 1000
    x2 = jax.random.normal(kx2, (batch2, input_size), jnp.float32)
    out2 = jax.block_until_ready(my_network_forward(x2, w1, b1, w2, b2))
    ref2 = jnp.maximum(x2 @ w1 + b1, 0.0) @ w2 + b2
    assert out2.shape == (batch2, out_width)
    assert jnp.allclose(out2, ref2, atol=1e-5, rtol=1e-5)

    print("KERNEL_OK")
</pallas_src>

<mosaic_0001>
module attributes {stable_mosaic.version = 11 : i64} {
  func.func @_mlp_kernel(%arg0: i32, %arg1: memref<8x32xf32, #tpu.memory_space<vmem>>, %arg2: memref<32x128xf32, #tpu.memory_space<vmem>>, %arg3: memref<1x128xf32, #tpu.memory_space<vmem>>, %arg4: memref<128x128xf32, #tpu.memory_space<vmem>>, %arg5: memref<1x128xf32, #tpu.memory_space<vmem>>, %arg6: memref<8x128xf32, #tpu.memory_space<vmem>>) attributes {dimension_semantics = [#tpu.dimension_semantics<parallel>], iteration_bounds = array<i64: 1>, scalar_prefetch = 0 : i64, scratch_operands = 0 : i64, tpu.core_type = #tpu.core_type<tc>, window_params = [{transform_indices = @transform_0, window_bounds = array<i64: 8, 32>}, {pipeline_mode = #tpu.pipeline_mode<synchronous>, transform_indices = @transform_1, window_bounds = array<i64: 32, 128>}, {pipeline_mode = #tpu.pipeline_mode<synchronous>, transform_indices = @transform_2, window_bounds = array<i64: 1, 128>}, {pipeline_mode = #tpu.pipeline_mode<synchronous>, transform_indices = @transform_3, window_bounds = array<i64: 128, 128>}, {pipeline_mode = #tpu.pipeline_mode<synchronous>, transform_indices = @transform_4, window_bounds = array<i64: 1, 128>}, {transform_indices = @transform_5, window_bounds = array<i64: 8, 128>}]} {
    %c0 = arith.constant 0 : index
    %c0_0 = arith.constant 0 : index
    %0 = vector.load %arg1[%c0, %c0_0] : memref<8x32xf32, #tpu.memory_space<vmem>>, vector<8x32xf32>
    %c0_1 = arith.constant 0 : index
    %c0_2 = arith.constant 0 : index
    %1 = vector.load %arg2[%c0_1, %c0_2] : memref<32x128xf32, #tpu.memory_space<vmem>>, vector<32x128xf32>
    %cst = arith.constant dense<0.000000e+00> : vector<8x128xf32>
    %2 = tpu.matmul %0, %1, %cst {dimension_numbers = #tpu.dot_dimension_numbers<[1], [0], [0], [1], [0, 0, 1, 1], [], []>} : vector<8x32xf32>, vector<32x128xf32>, vector<8x128xf32> -> vector<8x128xf32>
    %c0_3 = arith.constant 0 : index
    %c0_4 = arith.constant 0 : index
    %3 = vector.load %arg3[%c0_3, %c0_4] : memref<1x128xf32, #tpu.memory_space<vmem>>, vector<1x128xf32>
    %4 = vector.broadcast %3 : vector<1x128xf32> to vector<8x128xf32>
    %5 = arith.addf %2, %4 : vector<8x128xf32>
    %cst_5 = arith.constant 0.000000e+00 : f32
    %6 = vector.broadcast %cst_5 : f32 to vector<8x128xf32>
    %7 = arith.maximumf %5, %6 : vector<8x128xf32>
    %c0_6 = arith.constant 0 : index
    %c0_7 = arith.constant 0 : index
    %8 = vector.load %arg4[%c0_6, %c0_7] : memref<128x128xf32, #tpu.memory_space<vmem>>, vector<128x128xf32>
    %cst_8 = arith.constant dense<0.000000e+00> : vector<8x128xf32>
    %9 = tpu.matmul %7, %8, %cst_8 {dimension_numbers = #tpu.dot_dimension_numbers<[1], [0], [0], [1], [0, 0, 1, 1], [], []>} : vector<8x128xf32>, vector<128x128xf32>, vector<8x128xf32> -> vector<8x128xf32>
    %c0_9 = arith.constant 0 : index
    %c0_10 = arith.constant 0 : index
    %10 = vector.load %arg5[%c0_9, %c0_10] : memref<1x128xf32, #tpu.memory_space<vmem>>, vector<1x128xf32>
    %11 = vector.broadcast %10 : vector<1x128xf32> to vector<8x128xf32>
    %12 = arith.addf %9, %11 : vector<8x128xf32>
    %c0_11 = arith.constant 0 : index
    %c0_12 = arith.constant 0 : index
    %13 = vector.load %arg6[%c0_11, %c0_12] : memref<8x128xf32, #tpu.memory_space<vmem>>, vector<8x128xf32>
    tpu.vector_store %arg6[%c0_11, %c0_12], %12 {strides = array<i32>} : memref<8x128xf32, #tpu.memory_space<vmem>>, vector<8x128xf32>,
    return
  }
  func.func @transform_0(%arg0: i32) -> (i32, i32) {
    %c0_i32 = arith.constant 0 : i32
    %c0_i32_0 = arith.constant 0 : i32
    return %arg0, %c0_i32 : i32, i32
  }
  func.func @transform_1(%arg0: i32) -> (i32, i32) {
    %c0_i32 = arith.constant 0 : i32
    %c0_i32_0 = arith.constant 0 : i32
    %c0_i32_1 = arith.constant 0 : i32
    return %c0_i32, %c0_i32_0 : i32, i32
  }
  func.func @transform_2(%arg0: i32) -> (i32, i32) {
    %c0_i32 = arith.constant 0 : i32
    %c0_i32_0 = arith.constant 0 : i32
    %c0_i32_1 = arith.constant 0 : i32
    return %c0_i32, %c0_i32_0 : i32, i32
  }
  func.func @transform_3(%arg0: i32) -> (i32, i32) {
    %c0_i32 = arith.constant 0 : i32
    %c0_i32_0 = arith.constant 0 : i32
    %c0_i32_1 = arith.constant 0 : i32
    return %c0_i32, %c0_i32_0 : i32, i32
  }
  func.func @transform_4(%arg0: i32) -> (i32, i32) {
    %c0_i32 = arith.constant 0 : i32
    %c0_i32_0 = arith.constant 0 : i32
    %c0_i32_1 = arith.constant 0 : i32
    return %c0_i32, %c0_i32_0 : i32, i32
  }
  func.func @transform_5(%arg0: i32) -> (i32, i32) {
    %c0_i32 = arith.constant 0 : i32
    %c0_i32_0 = arith.constant 0 : i32
    return %arg0, %c0_i32 : i32, i32
  }
}

</mosaic_0001>

<bundles_post_ra>
// kernel: my_network_forward.1
= control target key start
LH: loop header
LB: loop body
LE: loop exit
PB: predicated region body
PF: predicated region fallthrough
CT: control target
= control target key end

     0   :  { %v278_v0 = vmov 0.0   ;;  %vm279_vm0 = vmmov 0   ;;  %vm32_vm1 = vcmask 261120   ;;  %s406_s1 = inlined_call_operand.vmem [shape: f32[32,128], index: 1, kind: input, shape index: {}]   ;;  %s407_s3 = inlined_call_operand.vmem [shape: f32[128,128], index: 3, kind: input, shape index: {}]   ;;  %s408_s0 = inlined_call_operand.vmem [shape: f32[8,32], index: 0, kind: input, shape index: {}]   ;;  %s409_s2 = inlined_call_operand.vmem [shape: f32[1,128], index: 2, kind: input, shape index: {}]   ;;  %s410_s4 = inlined_call_operand.vmem [shape: f32[1,128], index: 4, kind: input, shape index: {}]   ;;  %s411_s5 = inlined_call_operand.vmem [shape: f32[8,128], index: 5, kind: output, shape index: {}]  }
   0x1   :  { %230 = vmatprep.subr.mxu0 %v278_v0  ;;  %v24_v1 = vld [vmem:[%s406_s1 + $0x18] sm:$0xff]  ;;  %v23_v2 = vld [vmem:[%s406_s1 + $0x10] sm:$0xff]  ;;  %238 = vmatprep.mubr.msk.f32.mxu0 %vm279_vm0, %v278_v0  ;;  %v22_v4 = vld [vmem:[%s406_s1 + $0x8] sm:$0xff] }
   0x2   :  { %231 = vmatpush3.msra.mxu0 %v24_v1  ;;  %241 = vmatprep.subr.mxu1 %v278_v0  ;;  %v122_v3 = vld [vmem:[%s407_s3 + $0x78] sm:$0xff]  ;;  %v121_v5 = vld [vmem:[%s407_s3 + $0x70] sm:$0xff]  ;;  %v120_v6 = vld [vmem:[%s407_s3 + $0x68] sm:$0xff] }
   0x3   :  { %232 = vmatprep.subr.mxu0 %v278_v0  ;;  %242 = vmatpush3.msra.mxu1 %v122_v3  ;;  %v21_v7 = vld [vmem:[%s406_s1] sm:$0xff]  ;;  %v118_v10 = vld [vmem:[%s407_s3 + $0x58] sm:$0xff]  ;;  %v117_v11 = vld [vmem:[%s407_s3 + $0x50] sm:$0xff] }
   0x4   :  { %233 = vmatpush3.msra.mxu0 %v23_v2  ;;  %243 = vmatprep.subr.mxu1 %v278_v0  ;;  %v20_v8 = vld [vmem:[%s408_s0] sm:$0xff]  ;;  %v116_v12 = vld [vmem:[%s407_s3 + $0x48] sm:$0xff]  ;;  %v114_v14 = vld [vmem:[%s407_s3 + $0x38] sm:$0xff] }
   0x5   :  { %234 = vmatprep.subr.mxu0 %v278_v0  ;;  %244 = vmatpush3.msra.mxu1 %v121_v5  ;;  %v119_v9 = vld [vmem:[%s407_s3 + $0x60] sm:$0xff]  ;;  %v113_v15 = vld [vmem:[%s407_s3 + $0x30] sm:$0xff]  ;;  %v112_v16 = vld [vmem:[%s407_s3 + $0x28] sm:$0xff] }
   0x6   :  { %235 = vmatpush3.msra.mxu0 %v22_v4  ;;  %245 = vmatprep.subr.mxu1 %v278_v0  ;;  %v115_v13 = vld [vmem:[%s407_s3 + $0x40] sm:$0xff]  ;;  %v110_v18 = vld [vmem:[%s407_s3 + $0x18] sm:$0xff]  ;;  %v109_v19 = vld [vmem:[%s407_s3 + $0x10] sm:$0xff] }
   0x7   :  { %236 = vmatprep.subr.mxu0 %v278_v0  ;;  %246 = vmatpush3.msra.mxu1 %v120_v6  ;;  %v111_v17 = vld [vmem:[%s407_s3 + $0x20] sm:$0xff]  ;;  %v108_v20 = vld [vmem:[%s407_s3 + $0x8] sm:$0xff] }
   0x8   :  { %237 = vmatpush3.msra.mxu0 %v21_v7  ;;  %247 = vmatprep.subr.mxu1 %v278_v0  ;;  %v107_v21 = vld [vmem:[%s407_s3] sm:$0xff] }
   0x9   :  { %239 = vmatmul.mubr.msk.f32.vlgmr.msra.gmra.mxu0 %vm32_vm1, %v20_v8  ;;  %248 = vmatpush3.msra.mxu1 %v119_v9  ;;  %v205_v22 = vld [vmem:[%s409_s2] ss:$0 sm:$0xff] }
   0xa   :  { %249 = vmatprep.subr.mxu1 %v278_v0  ;;  %273 = vmatprep.mubr.msk.f32.mxu1 %vm279_vm0, %v278_v0  ;;  %v207_v27 = vld [vmem:[%s410_s4] ss:$0 sm:$0xff] }
   0xb   :  { %250 = vmatpush3.msra.mxu1 %v118_v10 }
   0xc   :  { %251 = vmatprep.subr.mxu1 %v278_v0 }
   0xd   :  { %252 = vmatpush3.msra.mxu1 %v117_v11 }
   0xe   :  { %253 = vmatprep.subr.mxu1 %v278_v0 }
   0xf   :  { %254 = vmatpush3.msra.mxu1 %v116_v12 }
  0x10   :  { %255 = vmatprep.subr.mxu1 %v278_v0 }
  0x11   :  { %256 = vmatpush3.msra.mxu1 %v115_v13 }
  0x12   :  { %257 = vmatprep.subr.mxu1 %v278_v0 }
  0x13   :  { %258 = vmatpush3.msra.mxu1 %v114_v14 }
  0x14   :  { %259 = vmatprep.subr.mxu1 %v278_v0 }
  0x15   :  { %260 = vmatpush3.msra.mxu1 %v113_v15 }
  0x16   :  { %261 = vmatprep.subr.mxu1 %v278_v0 }
  0x17   :  { %262 = vmatpush3.msra.mxu1 %v112_v16 }
  0x18   :  { %263 = vmatprep.subr.mxu1 %v278_v0 }
  0x19   :  { %264 = vmatpush3.msra.mxu1 %v111_v17 }
  0x1a   :  { %265 = vmatprep.subr.mxu1 %v278_v0 }
  0x1b   :  { %266 = vmatpush3.msra.mxu1 %v110_v18 }
  0x1c   :  { %267 = vmatprep.subr.mxu1 %v278_v0 }
  0x1d   :  { %268 = vmatpush3.msra.mxu1 %v109_v19 }
  0x1e   :  { %269 = vmatprep.subr.mxu1 %v278_v0 }
  0x1f   :  { %270 = vmatpush3.msra.mxu1 %v108_v20 }
  0x20   :  { %271 = vmatprep.subr.mxu1 %v278_v0 }
  0x21   :  { %272 = vmatpush3.msra.mxu1 %v107_v21 }
  0xc9   :  { %v102_v23 = vpop.f32.mrf.mxu0 }
  0xca   :  { %v103_v24 = vadd.f32 %v205_v22, %v102_v23 }
  0xcb   :  { %v240_v25 = vpop.f32.mrf.mxu0 }
  0xcc   :  { %v106_v26 = vmax.f32 %v103_v24, 0.0 }
  0xce   :  { %274 = vmatmul.mubr.f32.vlgmr.msra.gmra.mxu1 %v106_v26 }
 0x18e   :  { %v196_v28 = vpop.f32.mrf.mxu1 }
 0x18f   :  { %v197_v29 = vadd.f32 %v207_v27, %v196_v28 }
 0x190   :  { %v275_v30 = vpop.f32.mrf.mxu1 }
 0x191   :  { %200 = vst [vmem:[%s411_s5] sm:$0xff] %v197_v29 }

</bundles_post_ra>
